<compile_context>
chip_gen: v5e
topology: v5e:2x2
jax: 0.10.0
libtpu: 0.0.40
codegen_flags: <defaults>
</compile_context>

<pallas_src>
import functools

import jax
import jax.numpy as jnp
from jax.experimental import pallas as pl
from jax.experimental.pallas import tpu as pltpu


def _rmsnorm_kernel(x_ref, w_ref, o_ref, *, eps: float):
    # x_ref: (tile_rows, hidden) in input dtype; w_ref: (1, hidden) float32.
    xf = x_ref[...].astype(jnp.float32)
    var = jnp.mean(xf * xf, axis=-1, keepdims=True)
    inv = jax.lax.rsqrt(var + eps)  # EUP rsqrt
    o_ref[...] = (w_ref[...] * (xf * inv)).astype(o_ref.dtype)


def _cdiv(a: int, b: int) -> int:
    return -(-a // b)


def _round_up(a: int, b: int) -> int:
    return _cdiv(a, b) * b


def _physical_vmem_bytes() -> int:
    """Per-core VMEM capacity; conservative 64 MiB (v7x) fallback."""
    try:
        info = pltpu.get_tpu_info()
        v = getattr(info, "vmem_capacity_bytes", None)
        if v:
            return int(v)
    except Exception:
        pass
    return 64 * 1024 * 1024


def llama_rmsnorm(x: jax.Array, weight: jax.Array, eps: float = 1e-6) -> jax.Array:
    """RMSNorm over the last axis of x. weight has shape (hidden,)."""
    orig_shape = x.shape
    hidden = orig_shape[-1]
    x2d = x.reshape(-1, hidden)
    rows = x2d.shape[0]
    in_bytes = jnp.dtype(x.dtype).itemsize

    # --- Generation-aware VMEM budget -------------------------------------
    phys = _physical_vmem_bytes()                      # 64 MiB v7x, 128 MiB v5e/v6e
    vmem_cap = max(min((phys * 3) // 4, phys - (16 << 20)), 16 << 20)
    tile_budget = max(vmem_cap - (8 << 20), 8 << 20)   # headroom for Mosaic scratch

    # Per-row VMEM estimate: double-buffered input + double-buffered output
    # (input dtype) + ~2 live f32 intermediates.
    bytes_per_row = hidden * (2 * in_bytes + 2 * in_bytes + 2 * 4)

    # --- Tile-row selection (mem-bound: big tiles, but keep pipeline depth) --
    max_tile_rows = 1024                               # diminishing returns past ~512
    tile_rows = min(max_tile_rows, max(8, (tile_budget // bytes_per_row) // 8 * 8))

    # Aim for >= 4 grid steps (2 per v7x TC) when rows allow; a 512-row tile
    # is already ~85% of roofline, so shrinking for pipeline depth is cheap.
    min_steps = 4
    if rows >= min_steps * 8:
        tile_rows = min(tile_rows, _round_up(_cdiv(rows, min_steps), 8))
    # Never use a tile larger than the (8-rounded) problem.
    tile_rows = max(8, min(tile_rows, _round_up(rows, 8)))

    grid_steps = _cdiv(rows, tile_rows)
    # Prefer an even step count so both v7x TensorCores get work.
    if grid_steps > 1 and grid_steps % 2 == 1:
        alt = _round_up(_cdiv(rows, grid_steps + 1), 8)
        if alt >= 8 and _cdiv(rows, alt) % 2 == 0:
            tile_rows = alt
            grid_steps = _cdiv(rows, alt)

    est_bytes = (
        4 * tile_rows * hidden * in_bytes   # in + out tiles, double-buffered
        + 2 * tile_rows * hidden * 4        # f32 intermediates (single-buffered)
        + 2 * hidden * 4                    # weight
    )
    vmem_limit = int(min(vmem_cap, max(est_bytes + (8 << 20), 16 << 20)))

    w2d = weight.astype(jnp.float32).reshape(1, hidden)

    out2d = pl.pallas_call(
        functools.partial(_rmsnorm_kernel, eps=eps),
        out_shape=jax.ShapeDtypeStruct((rows, hidden), x.dtype),
        grid_spec=pltpu.PrefetchScalarGridSpec(
            num_scalar_prefetch=0,
            grid=(grid_steps,),
            in_specs=[
                pl.BlockSpec((tile_rows, hidden), lambda i: (i, 0)),
                pl.BlockSpec((1, hidden), lambda i: (0, 0)),
            ],
            out_specs=pl.BlockSpec((tile_rows, hidden), lambda i: (i, 0)),
        ),
        compiler_params=pltpu.CompilerParams(
            dimension_semantics=("parallel",),
            vmem_limit_bytes=vmem_limit,
        ),
    )(x2d, w2d)

    return out2d.reshape(orig_shape)


def _reference_rmsnorm(x, weight, eps=1e-6):
    xf = x.astype(jnp.float32)
    var = jnp.mean(xf * xf, axis=-1, keepdims=True)
    y = weight.astype(jnp.float32) * (xf * jax.lax.rsqrt(var + eps))
    return y.astype(x.dtype)


if __name__ == "__main__":
    hidden = 32
    # Deterministic parameter init: nn.Parameter(torch.ones(hidden_size))
    weight = jnp.ones((hidden,), dtype=jnp.float32)

    # Case 1: small, single-step grid.
    x = jax.random.normal(jax.random.PRNGKey(0), (2, 8, hidden), dtype=jnp.float32).astype(jnp.bfloat16)
    out = jax.block_until_ready(llama_rmsnorm(x, weight, eps=1e-6))
    ref = _reference_rmsnorm(x, weight, eps=1e-6)
    assert out.shape == x.shape and out.dtype == x.dtype
    assert jnp.allclose(out.astype(jnp.float32), ref.astype(jnp.float32), atol=1e-2, rtol=1e-2)

    # Case 2: ragged row count (rows not a multiple of 8) -> masked last block,
    # no pad/slice HBM pass.
    x2 = jax.random.normal(jax.random.PRNGKey(1), (3, 7, hidden), dtype=jnp.float32).astype(jnp.bfloat16)
    out2 = jax.block_until_ready(llama_rmsnorm(x2, weight, eps=1e-6))
    ref2 = _reference_rmsnorm(x2, weight, eps=1e-6)
    assert out2.shape == x2.shape
    assert jnp.allclose(out2.astype(jnp.float32), ref2.astype(jnp.float32), atol=1e-2, rtol=1e-2)

    # Case 3: enough rows to exercise the multi-step parallel grid path.
    x3 = jax.random.normal(jax.random.PRNGKey(2), (4, 24, hidden), dtype=jnp.float32).astype(jnp.bfloat16)
    out3 = jax.block_until_ready(llama_rmsnorm(x3, weight, eps=1e-6))
    ref3 = _reference_rmsnorm(x3, weight, eps=1e-6)
    assert out3.shape == x3.shape
    assert jnp.allclose(out3.astype(jnp.float32), ref3.astype(jnp.float32), atol=1e-2, rtol=1e-2)

    print("KERNEL_OK")
</pallas_src>

<mosaic_0001>
module attributes {stable_mosaic.version = 11 : i64} {
  func.func @_rmsnorm_kernel(%arg0: i32, %arg1: memref<16x32xbf16, #tpu.memory_space<vmem>>, %arg2: memref<1x32xf32, #tpu.memory_space<vmem>>, %arg3: memref<16x32xbf16, #tpu.memory_space<vmem>>) attributes {dimension_semantics = [#tpu.dimension_semantics<parallel>], iteration_bounds = array<i64: 1>, scalar_prefetch = 0 : i64, scratch_operands = 0 : i64, tpu.core_type = #tpu.core_type<tc>, window_params = [{transform_indices = @transform_0, window_bounds = array<i64: 16, 32>}, {pipeline_mode = #tpu.pipeline_mode<synchronous>, transform_indices = @transform_1, window_bounds = array<i64: 1, 32>}, {transform_indices = @transform_2, window_bounds = array<i64: 16, 32>}]} {
    %c0 = arith.constant 0 : index
    %c0_0 = arith.constant 0 : index
    %0 = vector.load %arg1[%c0, %c0_0] : memref<16x32xbf16, #tpu.memory_space<vmem>>, vector<16x32xbf16>
    %1 = arith.extf %0 : vector<16x32xbf16> to vector<16x32xf32>
    %2 = arith.mulf %1, %1 : vector<16x32xf32>
    %cst = arith.constant dense<0.000000e+00> : vector<16xf32>
    %3 = vector.multi_reduction <add>, %2, %cst [1] : vector<16x32xf32> to vector<16xf32>
    %4 = vector.shape_cast %3 : vector<16xf32> to vector<16x1xf32>
    %cst_1 = arith.constant 3.200000e+01 : f32
    %5 = vector.broadcast %cst_1 : f32 to vector<16x1xf32>
    %6 = arith.divf %4, %5 : vector<16x1xf32>
    %cst_2 = arith.constant 9.99999997E-7 : f32
    %7 = vector.broadcast %cst_2 : f32 to vector<16x1xf32>
    %8 = arith.addf %6, %7 : vector<16x1xf32>
    %9 = math.rsqrt %8 : vector<16x1xf32>
    %c0_3 = arith.constant 0 : index
    %c0_4 = arith.constant 0 : index
    %10 = vector.load %arg2[%c0_3, %c0_4] : memref<1x32xf32, #tpu.memory_space<vmem>>, vector<1x32xf32>
    %11 = vector.broadcast %9 : vector<16x1xf32> to vector<16x32xf32>
    %12 = arith.mulf %1, %11 : vector<16x32xf32>
    %13 = vector.broadcast %10 : vector<1x32xf32> to vector<16x32xf32>
    %14 = arith.mulf %13, %12 : vector<16x32xf32>
    %15 = arith.truncf %14 : vector<16x32xf32> to vector<16x32xbf16>
    %c0_5 = arith.constant 0 : index
    %c0_6 = arith.constant 0 : index
    %16 = vector.load %arg3[%c0_5, %c0_6] : memref<16x32xbf16, #tpu.memory_space<vmem>>, vector<16x32xbf16>
    tpu.vector_store %arg3[%c0_5, %c0_6], %15 {strides = array<i32>} : memref<16x32xbf16, #tpu.memory_space<vmem>>, vector<16x32xbf16>,
    return
  }
  func.func @transform_0(%arg0: i32) -> (i32, i32) {
    %c0_i32 = arith.constant 0 : i32
    %c0_i32_0 = arith.constant 0 : i32
    return %arg0, %c0_i32 : i32, i32
  }
  func.func @transform_1(%arg0: i32) -> (i32, i32) {
    %c0_i32 = arith.constant 0 : i32
    %c0_i32_0 = arith.constant 0 : i32
    %c0_i32_1 = arith.constant 0 : i32
    return %c0_i32, %c0_i32_0 : i32, i32
  }
  func.func @transform_2(%arg0: i32) -> (i32, i32) {
    %c0_i32 = arith.constant 0 : i32
    %c0_i32_0 = arith.constant 0 : i32
    return %arg0, %c0_i32 : i32, i32
  }
}

</mosaic_0001>

<bundles_post_ra>
// kernel: tpu_custom_call.1
= control target key start
LH: loop header
LB: loop body
LE: loop exit
PB: predicated region body
PF: predicated region fallthrough
CT: control target
= control target key end

     0   :  { %7 = vsyncpa [#allocation3], 0  ;;  %s250_s0 = inlined_call_operand.hbm [shape: bf16[16,32], index: 0, kind: input, shape index: {}]   ;;  %s251_s1 = inlined_call_operand.hbm [shape: f32[1,32], index: 1, kind: input, shape index: {}]   ;;  %s252_s2 = inlined_call_operand.hbm [shape: bf16[16,32], index: 2, kind: output, shape index: {}]  }
   0x1   :  { %8 = vsyncpa [#allocation6], 0 }
   0x2   :  { %9 = vsyncpa [#allocation4], 0  ;;  %s14_s11 = sshll.u32 %s250_s0, 4  ;;  %s214_s12 = smov [#allocation2]   ;;  %s15_s11 = int_to_ptr.hbm [resolvable:$true] %s14_s11 }
   0x3   :  { %s16_s13 = sshll.u32 %s214_s12, 4  ;;  %s28_s16 = sshll.u32 %s251_s1, 4  ;;  %s17_s13 = int_to_ptr.vmem [resolvable:$true] %s16_s13  ;;  %s29_s16 = int_to_ptr.hbm [resolvable:$true] %s28_s16 }
   0x4   :  { %s215_s17 = smov 64   ;;  %s216_s18 = smov 4  }
   0x5   :  { %22 = dma.hbm_to_vmem [thread:$0]  %s15_s11, 128, %s17_s13, [#allocation3], %s215_s17, %s215_s17, %s216_s18  }
   0x6   :  { %s217_s19 = smov [#allocation5]  }
   0x7   :  { %s30_s20 = sshll.u32 %s217_s19, 4  ;;  %s31_s20 = int_to_ptr.vmem [resolvable:$true] %s30_s20 }
   0x8   :  { %33 = dma.hbm_to_vmem [thread:$0]  %s29_s16, 16, %s31_s20, [#allocation6]  }
   0x9   :  { %208 = dma.done.wait [#allocation3], 128  }
   0xa   :  { %209 = vsyncadd [#allocation3], 4294967168 }
   0xb   :  { %210 = dma.done.wait [#allocation6], 16  }
   0xc   :  { %211 = vsyncadd [#allocation6], 4294967280  ;;  %v120_v0 = vld [vmem:[#allocation2] sm:$0xff]   ;;  %vm48_vm0 = vcmask 261120   ;;  %v218_v7 = vmov 32.0   ;;  %vm96_vm6 = vcmask 257024  }
   0xd   :  { %v121_v1 = vunpack.c.l.bf16 %v120_v0  ;;  %v122_v3 = vunpack.c.h.bf16 %v120_v0  ;;  %130 = vrcp.f32 %v218_v7  ;;  %v129_v28 = vld [vmem:[#allocation5] ss:$0 sm:$0xff]  ;;  %s219_s0 = smov [#allocation7]   ;;  %s105_s23 = sshll.u32 %s252_s2, 4  ;;  %s106_s23 = int_to_ptr.hbm [resolvable:$true] %s105_s23 }
   0xe   :  { %s103_s1 = sshll.u32 %s219_s0, 4  ;;  %s104_s1 = int_to_ptr.vmem [resolvable:$true] %s103_s1 }
   0xf   :  { %v46_v2 = vmul.f32 %v121_v1, %v121_v1  ;;  %v47_v5 = vmul.f32 %v122_v3, %v122_v3 }
  0x11   :  { %v49_v4 = vsel %vm48_vm0, %v46_v2, 0.0  ;;  %v52_v6 = vsel %vm48_vm0, %v47_v5, 0.0 }
  0x12   :  { %50 = vadd.xlane.f32.xlu0 %v49_v4 }
  0x13   :  { %v131_v8 = vpop.eup %130 }
  0x14   :  { %v56_v9 = vmul.f32 32.0, %v131_v8  ;;  %vm60_vm1 = vweird.f32 %v131_v8 }
  0x16   :  { %v57_v10 = vsub.f32 1.0, %v56_v9 }
  0x18   :  { %v58_v11 = vmul.f32 %v131_v8, %v57_v10 }
  0x1a   :  { %53 = vadd.xlane.f32.xlu0 %v52_v6  ;;  %v59_v12 = vadd.f32 %v131_v8, %v58_v11 }
  0x1c   :  { %v61_v13 = vsel %vm60_vm1, %v131_v8, %v59_v12 }
  0x85   :  { %v51_v14 = vpop.xlane.xlu0 %50 }
  0x86   :  { %v62_v15 = vmul.f32 %v61_v13, %v51_v14 }
  0x88   :  { %v64_v16 = vadd.f32 1e-06, %v62_v15 }
  0x8a   :  { %132 = vrsqrt.f32 %v64_v16  ;;  %vm72_vm3 = vweird.f32 %v64_v16 }
  0x8d   :  { %v54_v17 = vpop.xlane.xlu0 %53 }
  0x8e   :  { %v63_v18 = vmul.f32 %v61_v13, %v54_v17 }
  0x90   :  { %v133_v19 = vpop.eup %132  ;;  %v65_v20 = vadd.f32 1e-06, %v63_v18 }
  0x91   :  { %v67_v21 = vmul.f32 %v133_v19, %v64_v16  ;;  %vm73_vm2 = vweird.f32 %v133_v19 }
  0x92   :  { %134 = vrsqrt.f32 %v65_v20  ;;  %vm74_vm4 = vmor %vm72_vm3, %vm73_vm2  ;;  %vm82_vm7 = vweird.f32 %v65_v20 }
  0x93   :  { %v68_v22 = vmul.f32 %v133_v19, %v67_v21 }
  0x95   :  { %v69_v23 = vmul.f32 0.5, %v68_v22 }
  0x97   :  { %v70_v24 = vsub.f32 1.5, %v69_v23 }
  0x98   :  { %v135_v25 = vpop.eup %134 }
  0x99   :  { %v71_v26 = vmul.f32 %v133_v19, %v70_v24  ;;  %v77_v27 = vmul.f32 %v135_v25, %v65_v20  ;;  %vm83_vm5 = vweird.f32 %v135_v25 }
  0x9a   :  { %vm84_vm8 = vmor %vm82_vm7, %vm83_vm5 }
  0x9b   :  { %v75_v29 = vsel %vm74_vm4, %v133_v19, %v71_v26  ;;  %v78_v30 = vmul.f32 %v135_v25, %v77_v27 }
  0x9c   :  { %v87_v31 = vmul.f32 %v121_v1, %v75_v29 }
  0x9d   :  { %v79_v32 = vmul.f32 0.5, %v78_v30 }
  0x9e   :  { %v92_v33 = vmul.f32 %v129_v28, %v87_v31 }
  0x9f   :  { %v80_v34 = vsub.f32 1.5, %v79_v32 }
  0xa0   :  { %v94_v35 = vpack.c.bf16 %v92_v33, %v92_v33 }
  0xa1   :  { %v81_v36 = vmul.f32 %v135_v25, %v80_v34 }
  0xa2   :  { %97 = vst.msk [vmem:[#allocation7] sm:$0xf] %vm96_vm6, %v94_v35 }
  0xa3   :  { %v85_v37 = vsel %vm84_vm8, %v135_v25, %v81_v36 }
  0xa4   :  { %v88_v38 = vmul.f32 %v122_v3, %v85_v37 }
  0xa6   :  { %v93_v39 = vmul.f32 %v129_v28, %v88_v38 }
  0xa8   :  { %v95_v40 = vpack.c.bf16 %v93_v39, %v93_v39 }
  0xaa   :  { %98 = vst.msk [vmem:[#allocation7 + $0x4] sm:$0xf] %vm96_vm6, %v95_v40 }
  0xab   :  { %111 = dma.vmem_to_hbm [thread:$0]  %s104_s1, 128, %s106_s23, [#allocation4], %s215_s17, %s215_s17, %s216_s18  }
  0xac   :  { %212 = dma.done.wait [#allocation4], 128  }
  0xad   :  { %213 = vsyncadd [#allocation4], 4294967168 }
  0xae   :  { %116 = vsyncpa [#allocation3], 1 }
  0xaf   :  { %117 = vsyncpa [#allocation6], 1 }
  0xb0   :  { %118 = vsyncpa [#allocation4], 1 }

</bundles_post_ra>
